<compile_context>
chip_gen: v7x
topology: tpu7x:2x2x1
jax: 0.10.0
libtpu: 0.0.40
codegen_flags: <defaults>
</compile_context>

<pallas_src>
import jax
import jax.numpy as jnp
from jax.experimental import pallas as pl
from jax.experimental.pallas import tpu as pltpu


# ---------------------------------------------------------------------------
# Kernel
# ---------------------------------------------------------------------------
def _make_basic_block_kernel(H, W, Cin, Cout):
    def kernel(x_ref, w1_ref, s1_ref, b1_ref, w2_ref, s2_ref, b2_ref,
               o_ref, xpad_s, y1_s):
        # x_ref   : (1, H, W*Cin)        f32  whole image (lane-dense row layout)
        # w1_ref  : (3, W*Cin,  W*Cout)  bf16 clipped-Toeplitz conv1 weight
        # w2_ref  : (3, W*Cout, W*Cout)  bf16 clipped-Toeplitz conv2 weight
        # s*/b*   : (1, W*Cout)          f32  folded-BN scale/bias tiled over W
        # o_ref   : (1, H, W*Cout)       f32  output image
        # xpad_s  : (H+2, W*Cin)         bf16 vertically zero-padded input slab
        # y1_s    : (H+2, W*Cout)        bf16 vertically zero-padded conv1 act.

        # ---- stage 0: bf16 input slab (single cast; only pad rows zeroed) ---
        xpad_s[pl.ds(0, 1), :] = jnp.zeros((1, W * Cin), jnp.bfloat16)
        xpad_s[pl.ds(H + 1, 1), :] = jnp.zeros((1, W * Cin), jnp.bfloat16)
        xpad_s[pl.ds(1, H), :] = x_ref[0].astype(jnp.bfloat16)

        # ---- stage 1: conv1 (3 MXU pushes, K = W*Cin) + bn1 + relu ----------
        y1 = jnp.dot(xpad_s[pl.ds(0, H), :], w1_ref[0],
                     preferred_element_type=jnp.float32)
        y1 = y1 + jnp.dot(xpad_s[pl.ds(1, H), :], w1_ref[1],
                          preferred_element_type=jnp.float32)
        y1 = y1 + jnp.dot(xpad_s[pl.ds(2, H), :], w1_ref[2],
                          preferred_element_type=jnp.float32)
        y1 = jnp.maximum(y1 * s1_ref[...] + b1_ref[...], 0.0)

        # ---- stash conv1 activation (bf16, single cast, 1-row zero halo) ----
        y1_s[pl.ds(0, 1), :] = jnp.zeros((1, W * Cout), jnp.bfloat16)
        y1_s[pl.ds(H + 1, 1), :] = jnp.zeros((1, W * Cout), jnp.bfloat16)
        y1_s[pl.ds(1, H), :] = y1.astype(jnp.bfloat16)

        # ---- stage 2: conv2 + bn2 + identity residual + relu ----------------
        y2 = jnp.dot(y1_s[pl.ds(0, H), :], w2_ref[0],
                     preferred_element_type=jnp.float32)
        y2 = y2 + jnp.dot(y1_s[pl.ds(1, H), :], w2_ref[1],
                          preferred_element_type=jnp.float32)
        y2 = y2 + jnp.dot(y1_s[pl.ds(2, H), :], w2_ref[2],
                          preferred_element_type=jnp.float32)
        o_ref[0] = jnp.maximum(y2 * s2_ref[...] + b2_ref[...] + x_ref[0], 0.0)

    return kernel


# ---------------------------------------------------------------------------
# Wrapper-side helpers
# ---------------------------------------------------------------------------
def _toeplitz_conv_weight(w_hwio, W):
    """(3,3,Cin,Cout) -> (3, W*Cin, W*Cout) clipped block-banded bf16 weight.

    T[ky, i*Cin + ci, j*Cout + co] = w[ky, kx, ci, co]   with i = j + kx - 1,
    and out-of-range input columns i clipped out (this IS the horizontal
    SAME-padding), so a (rows, W*Cin) slab matmul'd with T[ky] yields the
    conv contribution of kernel row ky for all W output columns.
    """
    KH, KW, Cin, Cout = w_hwio.shape
    rows = []
    for ky in range(KH):
        acc = jnp.zeros((W * Cin, W * Cout), jnp.float32)
        for kx in range(KW):
            # sel[i, j] = 1 iff input column i == j + kx - 1 (clipped at edges)
            sel = jnp.eye(W, W, k=1 - kx, dtype=jnp.float32)
            blk = jnp.einsum('pq,io->piqo', sel,
                             w_hwio[ky, kx].astype(jnp.float32))
            acc = acc + blk.reshape(W * Cin, W * Cout)
        rows.append(acc)
    return jnp.stack(rows, 0).astype(jnp.bfloat16)


def _tile_channel_vec(v, W):
    """(C,) per-channel vector -> (1, W*C) tiled to match the (row, W*C) layout."""
    C = v.shape[0]
    return jnp.tile(v.astype(jnp.float32), W).reshape(1, W * C)


# ---------------------------------------------------------------------------
# Public forward (NCHW in / NCHW out, like the PyTorch module)
# ---------------------------------------------------------------------------
def basic_block_forward(x_nchw, params):
    N, Cin, H, W = x_nchw.shape
    Cout = params["w1"].shape[-1]
    assert params["w1"].shape[2] == Cin
    assert Cin == Cout, "identity residual requires inplanes == planes"
    # TODO(synk): stride>1 / downsample path not implemented.

    x_nhwc = jnp.transpose(x_nchw, (0, 2, 3, 1)).astype(jnp.float32)
    x2d = x_nhwc.reshape(N, H, W * Cin)            # lane-dense activation layout

    w1t = _toeplitz_conv_weight(params["w1"], W)   # (3, W*Cin,  W*Cout) bf16
    w2t = _toeplitz_conv_weight(params["w2"], W)   # (3, W*Cout, W*Cout) bf16
    s1t = _tile_channel_vec(params["s1"], W)
    b1t = _tile_channel_vec(params["b1"], W)
    s2t = _tile_channel_vec(params["s2"], W)
    b2t = _tile_channel_vec(params["b2"], W)

    kernel = _make_basic_block_kernel(H, W, Cin, Cout)

    out2d = pl.pallas_call(
        kernel,
        out_shape=jax.ShapeDtypeStruct((N, H, W * Cout), jnp.float32),
        grid=(N,),
        in_specs=[
            pl.BlockSpec((1, H, W * Cin), lambda n: (n, 0, 0)),
            pl.BlockSpec((3, W * Cin, W * Cout), lambda n: (0, 0, 0)),
            pl.BlockSpec((1, W * Cout), lambda n: (0, 0)),
            pl.BlockSpec((1, W * Cout), lambda n: (0, 0)),
            pl.BlockSpec((3, W * Cout, W * Cout), lambda n: (0, 0, 0)),
            pl.BlockSpec((1, W * Cout), lambda n: (0, 0)),
            pl.BlockSpec((1, W * Cout), lambda n: (0, 0)),
        ],
        out_specs=pl.BlockSpec((1, H, W * Cout), lambda n: (n, 0, 0)),
        scratch_shapes=[
            pltpu.VMEM((H + 2, W * Cin), jnp.bfloat16),    # padded input slab
            pltpu.VMEM((H + 2, W * Cout), jnp.bfloat16),   # padded conv1 act.
        ],
        compiler_params=pltpu.CompilerParams(
            dimension_semantics=("parallel",),   # one image per TC on v7x
            vmem_limit_bytes=32 * 1024 * 1024,   # << usage at these shapes
        ),
    )(x2d, w1t, s1t, b1t, w2t, s2t, b2t)

    out = out2d.reshape(N, H, W, Cout)
    return jnp.transpose(out, (0, 3, 1, 2))


# ---------------------------------------------------------------------------
# Synthetic parameters + pure-JAX reference
# ---------------------------------------------------------------------------
def make_params(key, inplanes, planes):
    """Deterministic synthetic parameters (BN folded into scale/bias)."""
    k1, k2, k3, k4, k5, k6, k7, k8 = jax.random.split(key, 8)
    eps = 1e-5

    w1 = jax.random.normal(k1, (3, 3, inplanes, planes), jnp.float32) * 0.1
    w2 = jax.random.normal(k2, (3, 3, planes, planes), jnp.float32) * 0.1

    gamma1 = 1.0 + 0.1 * jax.random.normal(k3, (planes,), jnp.float32)
    beta1 = 0.1 * jax.random.normal(k4, (planes,), jnp.float32)
    mean1 = 0.1 * jax.random.normal(k5, (planes,), jnp.float32)
    var1 = jnp.abs(jax.random.normal(k6, (planes,), jnp.float32)) + 0.5

    gamma2 = 1.0 + 0.1 * jax.random.normal(k7, (planes,), jnp.float32)
    beta2 = 0.1 * jax.random.normal(k8, (planes,), jnp.float32)
    mean2 = jnp.zeros((planes,), jnp.float32)
    var2 = jnp.ones((planes,), jnp.float32)

    s1 = gamma1 / jnp.sqrt(var1 + eps)
    b1 = beta1 - mean1 * s1
    s2 = gamma2 / jnp.sqrt(var2 + eps)
    b2 = beta2 - mean2 * s2

    return {"w1": w1, "s1": s1, "b1": b1, "w2": w2, "s2": s2, "b2": b2}


def _reference_forward(x_nchw, params):
    """Pure-JAX f32 reference (lax conv) matching the PyTorch module."""
    x = jnp.transpose(x_nchw, (0, 2, 3, 1)).astype(jnp.float32)

    def conv(x, w):
        return jax.lax.conv_general_dilated(
            x, w, window_strides=(1, 1), padding="SAME",
            dimension_numbers=("NHWC", "HWIO", "NHWC"))

    o = conv(x, params["w1"]) * params["s1"] + params["b1"]
    o = jnp.maximum(o, 0.0)
    o = conv(o, params["w2"]) * params["s2"] + params["b2"]
    o = jnp.maximum(o + x, 0.0)
    return jnp.transpose(o, (0, 3, 1, 2))


if __name__ == "__main__":
    key = jax.random.PRNGKey(0)
    kx, kp = jax.random.split(key)

    N, C, H, W = 2, 8, 16, 16          # stride=1, no downsample, W*C = 128 lanes
    x = jax.random.normal(kx, (N, C, H, W), jnp.float32)
    params = make_params(kp, inplanes=C, planes=C)

    out = jax.block_until_ready(basic_block_forward(x, params))
    ref = jax.block_until_ready(_reference_forward(x, params))

    assert out.shape == (N, C, H, W)
    max_err = float(jnp.max(jnp.abs(out - ref)))
    # bf16 MXU operands (f32 accumulation) vs f32 reference.
    assert max_err < 3e-2, f"mismatch vs reference: {max_err}"

    print("KERNEL_OK")
</pallas_src>

<mosaic_0001>
module attributes {stable_mosaic.version = 11 : i64} {
  func.func @kernel(%arg0: i32, %arg1: memref<1x16x128xf32, #tpu.memory_space<vmem>>, %arg2: memref<3x128x128xbf16, #tpu.memory_space<vmem>>, %arg3: memref<1x128xf32, #tpu.memory_space<vmem>>, %arg4: memref<1x128xf32, #tpu.memory_space<vmem>>, %arg5: memref<3x128x128xbf16, #tpu.memory_space<vmem>>, %arg6: memref<1x128xf32, #tpu.memory_space<vmem>>, %arg7: memref<1x128xf32, #tpu.memory_space<vmem>>, %arg8: memref<1x16x128xf32, #tpu.memory_space<vmem>>, %arg9: memref<18x128xbf16, #tpu.memory_space<vmem>>, %arg10: memref<18x128xbf16, #tpu.memory_space<vmem>>) attributes {dimension_semantics = [#tpu.dimension_semantics<parallel>], iteration_bounds = array<i64: 2>, scalar_prefetch = 0 : i64, scratch_operands = 2 : i64, tpu.core_type = #tpu.core_type<tc>, window_params = [{transform_indices = @transform_0, window_bounds = array<i64: 1, 16, 128>}, {pipeline_mode = #tpu.pipeline_mode<synchronous>, transform_indices = @transform_1, window_bounds = array<i64: 3, 128, 128>}, {pipeline_mode = #tpu.pipeline_mode<synchronous>, transform_indices = @transform_2, window_bounds = array<i64: 1, 128>}, {pipeline_mode = #tpu.pipeline_mode<synchronous>, transform_indices = @transform_3, window_bounds = array<i64: 1, 128>}, {pipeline_mode = #tpu.pipeline_mode<synchronous>, transform_indices = @transform_4, window_bounds = array<i64: 3, 128, 128>}, {pipeline_mode = #tpu.pipeline_mode<synchronous>, transform_indices = @transform_5, window_bounds = array<i64: 1, 128>}, {pipeline_mode = #tpu.pipeline_mode<synchronous>, transform_indices = @transform_6, window_bounds = array<i64: 1, 128>}, {transform_indices = @transform_7, window_bounds = array<i64: 1, 16, 128>}]} {
    %cst = arith.constant 0.000000e+00 : bf16
    %0 = vector.broadcast %cst : bf16 to vector<1x128xbf16>
    %c0 = arith.constant 0 : index
    %c0_0 = arith.constant 0 : index
    %1 = vector.load %arg9[%c0, %c0_0] : memref<18x128xbf16, #tpu.memory_space<vmem>>, vector<1x128xbf16>
    tpu.vector_store %arg9[%c0, %c0_0], %0 {strides = array<i32>} : memref<18x128xbf16, #tpu.memory_space<vmem>>, vector<1x128xbf16>,
    %cst_1 = arith.constant 0.000000e+00 : bf16
    %2 = vector.broadcast %cst_1 : bf16 to vector<1x128xbf16>
    %c17 = arith.constant 17 : index
    %c0_2 = arith.constant 0 : index
    %3 = vector.load %arg9[%c17, %c0_2] : memref<18x128xbf16, #tpu.memory_space<vmem>>, vector<1x128xbf16>
    tpu.vector_store %arg9[%c17, %c0_2], %2 {strides = array<i32>} : memref<18x128xbf16, #tpu.memory_space<vmem>>, vector<1x128xbf16>,
    %c0_3 = arith.constant 0 : index
    %c0_4 = arith.constant 0 : index
    %c0_5 = arith.constant 0 : index
    %4 = vector.load %arg1[%c0_3, %c0_4, %c0_5] : memref<1x16x128xf32, #tpu.memory_space<vmem>>, vector<1x16x128xf32>
    %5 = vector.shape_cast %4 : vector<1x16x128xf32> to vector<16x128xf32>
    %6 = arith.truncf %5 : vector<16x128xf32> to vector<16x128xbf16>
    %c1 = arith.constant 1 : index
    %c0_6 = arith.constant 0 : index
    %7 = vector.load %arg9[%c1, %c0_6] : memref<18x128xbf16, #tpu.memory_space<vmem>>, vector<16x128xbf16>
    tpu.vector_store %arg9[%c1, %c0_6], %6 {strides = array<i32>} : memref<18x128xbf16, #tpu.memory_space<vmem>>, vector<16x128xbf16>,
    %c0_7 = arith.constant 0 : index
    %c0_8 = arith.constant 0 : index
    %8 = vector.load %arg9[%c0_7, %c0_8] : memref<18x128xbf16, #tpu.memory_space<vmem>>, vector<16x128xbf16>
    %c0_9 = arith.constant 0 : index
    %c0_10 = arith.constant 0 : index
    %c0_11 = arith.constant 0 : index
    %9 = vector.load %arg2[%c0_9, %c0_10, %c0_11] : memref<3x128x128xbf16, #tpu.memory_space<vmem>>, vector<1x128x128xbf16>
    %10 = vector.shape_cast %9 : vector<1x128x128xbf16> to vector<128x128xbf16>
    %cst_12 = arith.constant dense<0.000000e+00> : vector<16x128xf32>
    %11 = tpu.matmul %8, %10, %cst_12 {dimension_numbers = #tpu.dot_dimension_numbers<[1], [0], [0], [1], [0, 0, 1, 1], [], []>} : vector<16x128xbf16>, vector<128x128xbf16>, vector<16x128xf32> -> vector<16x128xf32>
    %c1_13 = arith.constant 1 : index
    %c0_14 = arith.constant 0 : index
    %12 = vector.load %arg9[%c1_13, %c0_14] : memref<18x128xbf16, #tpu.memory_space<vmem>>, vector<16x128xbf16>
    %c1_15 = arith.constant 1 : index
    %c0_16 = arith.constant 0 : index
    %c0_17 = arith.constant 0 : index
    %13 = vector.load %arg2[%c1_15, %c0_16, %c0_17] : memref<3x128x128xbf16, #tpu.memory_space<vmem>>, vector<1x128x128xbf16>
    %14 = vector.shape_cast %13 : vector<1x128x128xbf16> to vector<128x128xbf16>
    %cst_18 = arith.constant dense<0.000000e+00> : vector<16x128xf32>
    %15 = tpu.matmul %12, %14, %cst_18 {dimension_numbers = #tpu.dot_dimension_numbers<[1], [0], [0], [1], [0, 0, 1, 1], [], []>} : vector<16x128xbf16>, vector<128x128xbf16>, vector<16x128xf32> -> vector<16x128xf32>
    %16 = arith.addf %11, %15 : vector<16x128xf32>
    %c2 = arith.constant 2 : index
    %c0_19 = arith.constant 0 : index
    %17 = vector.load %arg9[%c2, %c0_19] : memref<18x128xbf16, #tpu.memory_space<vmem>>, vector<16x128xbf16>
    %c2_20 = arith.constant 2 : index
    %c0_21 = arith.constant 0 : index
    %c0_22 = arith.constant 0 : index
    %18 = vector.load %arg2[%c2_20, %c0_21, %c0_22] : memref<3x128x128xbf16, #tpu.memory_space<vmem>>, vector<1x128x128xbf16>
    %19 = vector.shape_cast %18 : vector<1x128x128xbf16> to vector<128x128xbf16>
    %cst_23 = arith.constant dense<0.000000e+00> : vector<16x128xf32>
    %20 = tpu.matmul %17, %19, %cst_23 {dimension_numbers = #tpu.dot_dimension_numbers<[1], [0], [0], [1], [0, 0, 1, 1], [], []>} : vector<16x128xbf16>, vector<128x128xbf16>, vector<16x128xf32> -> vector<16x128xf32>
    %21 = arith.addf %16, %20 : vector<16x128xf32>
    %c0_24 = arith.constant 0 : index
    %c0_25 = arith.constant 0 : index
    %22 = vector.load %arg3[%c0_24, %c0_25] : memref<1x128xf32, #tpu.memory_space<vmem>>, vector<1x128xf32>
    %23 = vector.broadcast %22 : vector<1x128xf32> to vector<16x128xf32>
    %24 = arith.mulf %21, %23 : vector<16x128xf32>
    %c0_26 = arith.constant 0 : index
    %c0_27 = arith.constant 0 : index
    %25 = vector.load %arg4[%c0_26, %c0_27] : memref<1x128xf32, #tpu.memory_space<vmem>>, vector<1x128xf32>
    %26 = vector.broadcast %25 : vector<1x128xf32> to vector<16x128xf32>
    %27 = arith.addf %24, %26 : vector<16x128xf32>
    %cst_28 = arith.constant 0.000000e+00 : f32
    %28 = vector.broadcast %cst_28 : f32 to vector<16x128xf32>
    %29 = arith.maximumf %27, %28 : vector<16x128xf32>
    %cst_29 = arith.constant 0.000000e+00 : bf16
    %30 = vector.broadcast %cst_29 : bf16 to vector<1x128xbf16>
    %c0_30 = arith.constant 0 : index
    %c0_31 = arith.constant 0 : index
    %31 = vector.load %arg10[%c0_30, %c0_31] : memref<18x128xbf16, #tpu.memory_space<vmem>>, vector<1x128xbf16>
    tpu.vector_store %arg10[%c0_30, %c0_31], %30 {strides = array<i32>} : memref<18x128xbf16, #tpu.memory_space<vmem>>, vector<1x128xbf16>,
    %cst_32 = arith.constant 0.000000e+00 : bf16
    %32 = vector.broadcast %cst_32 : bf16 to vector<1x128xbf16>
    %c17_33 = arith.constant 17 : index
    %c0_34 = arith.constant 0 : index
    %33 = vector.load %arg10[%c17_33, %c0_34] : memref<18x128xbf16, #tpu.memory_space<vmem>>, vector<1x128xbf16>
    tpu.vector_store %arg10[%c17_33, %c0_34], %32 {strides = array<i32>} : memref<18x128xbf16, #tpu.memory_space<vmem>>, vector<1x128xbf16>,
    %34 = arith.truncf %29 : vector<16x128xf32> to vector<16x128xbf16>
    %c1_35 = arith.constant 1 : index
    %c0_36 = arith.constant 0 : index
    %35 = vector.load %arg10[%c1_35, %c0_36] : memref<18x128xbf16, #tpu.memory_space<vmem>>, vector<16x128xbf16>
    tpu.vector_store %arg10[%c1_35, %c0_36], %34 {strides = array<i32>} : memref<18x128xbf16, #tpu.memory_space<vmem>>, vector<16x128xbf16>,
    %c0_37 = arith.constant 0 : index
    %c0_38 = arith.constant 0 : index
    %36 = vector.load %arg10[%c0_37, %c0_38] : memref<18x128xbf16, #tpu.memory_space<vmem>>, vector<16x128xbf16>
    %c0_39 = arith.constant 0 : index
    %c0_40 = arith.constant 0 : index
    %c0_41 = arith.constant 0 : index
    %37 = vector.load %arg5[%c0_39, %c0_40, %c0_41] : memref<3x128x128xbf16, #tpu.memory_space<vmem>>, vector<1x128x128xbf16>
    %38 = vector.shape_cast %37 : vector<1x128x128xbf16> to vector<128x128xbf16>
    %cst_42 = arith.constant dense<0.000000e+00> : vector<16x128xf32>
    %39 = tpu.matmul %36, %38, %cst_42 {dimension_numbers = #tpu.dot_dimension_numbers<[1], [0], [0], [1], [0, 0, 1, 1], [], []>} : vector<16x128xbf16>, vector<128x128xbf16>, vector<16x128xf32> -> vector<16x128xf32>
    %c1_43 = arith.constant 1 : index
    %c0_44 = arith.constant 0 : index
    %40 = vector.load %arg10[%c1_43, %c0_44] : memref<18x128xbf16, #tpu.memory_space<vmem>>, vector<16x128xbf16>
    %c1_45 = arith.constant 1 : index
    %c0_46 = arith.constant 0 : index
    %c0_47 = arith.constant 0 : index
    %41 = vector.load %arg5[%c1_45, %c0_46, %c0_47] : memref<3x128x128xbf16, #tpu.memory_space<vmem>>, vector<1x128x128xbf16>
    %42 = vector.shape_cast %41 : vector<1x128x128xbf16> to vector<128x128xbf16>
    %cst_48 = arith.constant dense<0.000000e+00> : vector<16x128xf32>
    %43 = tpu.matmul %40, %42, %cst_48 {dimension_numbers = #tpu.dot_dimension_numbers<[1], [0], [0], [1], [0, 0, 1, 1], [], []>} : vector<16x128xbf16>, vector<128x128xbf16>, vector<16x128xf32> -> vector<16x128xf32>
    %44 = arith.addf %39, %43 : vector<16x128xf32>
    %c2_49 = arith.constant 2 : index
    %c0_50 = arith.constant 0 : index
    %45 = vector.load %arg10[%c2_49, %c0_50] : memref<18x128xbf16, #tpu.memory_space<vmem>>, vector<16x128xbf16>
    %c2_51 = arith.constant 2 : index
    %c0_52 = arith.constant 0 : index
    %c0_53 = arith.constant 0 : index
    %46 = vector.load %arg5[%c2_51, %c0_52, %c0_53] : memref<3x128x128xbf16, #tpu.memory_space<vmem>>, vector<1x128x128xbf16>
    %47 = vector.shape_cast %46 : vector<1x128x128xbf16> to vector<128x128xbf16>
    %cst_54 = arith.constant dense<0.000000e+00> : vector<16x128xf32>
    %48 = tpu.matmul %45, %47, %cst_54 {dimension_numbers = #tpu.dot_dimension_numbers<[1], [0], [0], [1], [0, 0, 1, 1], [], []>} : vector<16x128xbf16>, vector<128x128xbf16>, vector<16x128xf32> -> vector<16x128xf32>
    %49 = arith.addf %44, %48 : vector<16x128xf32>
    %c0_55 = arith.constant 0 : index
    %c0_56 = arith.constant 0 : index
    %50 = vector.load %arg6[%c0_55, %c0_56] : memref<1x128xf32, #tpu.memory_space<vmem>>, vector<1x128xf32>
    %51 = vector.broadcast %50 : vector<1x128xf32> to vector<16x128xf32>
    %52 = arith.mulf %49, %51 : vector<16x128xf32>
    %c0_57 = arith.constant 0 : index
    %c0_58 = arith.constant 0 : index
    %53 = vector.load %arg7[%c0_57, %c0_58] : memref<1x128xf32, #tpu.memory_space<vmem>>, vector<1x128xf32>
    %54 = vector.broadcast %53 : vector<1x128xf32> to vector<16x128xf32>
    %55 = arith.addf %52, %54 : vector<16x128xf32>
    %c0_59 = arith.constant 0 : index
    %c0_60 = arith.constant 0 : index
    %c0_61 = arith.constant 0 : index
    %56 = vector.load %arg1[%c0_59, %c0_60, %c0_61] : memref<1x16x128xf32, #tpu.memory_space<vmem>>, vector<1x16x128xf32>
    %57 = vector.shape_cast %56 : vector<1x16x128xf32> to vector<16x128xf32>
    %58 = arith.addf %55, %57 : vector<16x128xf32>
    %cst_62 = arith.constant 0.000000e+00 : f32
    %59 = vector.broadcast %cst_62 : f32 to vector<16x128xf32>
    %60 = arith.maximumf %58, %59 : vector<16x128xf32>
    %c0_63 = arith.constant 0 : index
    %c0_64 = arith.constant 0 : index
    %c0_65 = arith.constant 0 : index
    %61 = vector.load %arg8[%c0_63, %c0_64, %c0_65] : memref<1x16x128xf32, #tpu.memory_space<vmem>>, vector<1x16x128xf32>
    %62 = vector.shape_cast %61 : vector<1x16x128xf32> to vector<16x128xf32>
    %63 = vector.shape_cast %60 : vector<16x128xf32> to vector<1x16x128xf32>
    tpu.vector_store %arg8[%c0_63, %c0_64, %c0_65], %63 {strides = array<i32>} : memref<1x16x128xf32, #tpu.memory_space<vmem>>, vector<1x16x128xf32>,
    return
  }
  func.func @transform_0(%arg0: i32) -> (i32, i32, i32) {
    %c0_i32 = arith.constant 0 : i32
    %c0_i32_0 = arith.constant 0 : i32
    %c0_i32_1 = arith.constant 0 : i32
    return %arg0, %c0_i32, %c0_i32_0 : i32, i32, i32
  }
  func.func @transform_1(%arg0: i32) -> (i32, i32, i32) {
    %c0_i32 = arith.constant 0 : i32
    %c0_i32_0 = arith.constant 0 : i32
    %c0_i32_1 = arith.constant 0 : i32
    %c0_i32_2 = arith.constant 0 : i32
    return %c0_i32, %c0_i32_0, %c0_i32_1 : i32, i32, i32
  }
  func.func @transform_2(%arg0: i32) -> (i32, i32) {
    %c0_i32 = arith.constant 0 : i32
    %c0_i32_0 = arith.constant 0 : i32
    %c0_i32_1 = arith.constant 0 : i32
    return %c0_i32, %c0_i32_0 : i32, i32
  }
  func.func @transform_3(%arg0: i32) -> (i32, i32) {
    %c0_i32 = arith.constant 0 : i32
    %c0_i32_0 = arith.constant 0 : i32
    %c0_i32_1 = arith.constant 0 : i32
    return %c0_i32, %c0_i32_0 : i32, i32
  }
  func.func @transform_4(%arg0: i32) -> (i32, i32, i32) {
    %c0_i32 = arith.constant 0 : i32
    %c0_i32_0 = arith.constant 0 : i32
    %c0_i32_1 = arith.constant 0 : i32
    %c0_i32_2 = arith.constant 0 : i32
    return %c0_i32, %c0_i32_0, %c0_i32_1 : i32, i32, i32
  }
  func.func @transform_5(%arg0: i32) -> (i32, i32) {
    %c0_i32 = arith.constant 0 : i32
    %c0_i32_0 = arith.constant 0 : i32
    %c0_i32_1 = arith.constant 0 : i32
    return %c0_i32, %c0_i32_0 : i32, i32
  }
  func.func @transform_6(%arg0: i32) -> (i32, i32) {
    %c0_i32 = arith.constant 0 : i32
    %c0_i32_0 = arith.constant 0 : i32
    %c0_i32_1 = arith.constant 0 : i32
    return %c0_i32, %c0_i32_0 : i32, i32
  }
  func.func @transform_7(%arg0: i32) -> (i32, i32, i32) {
    %c0_i32 = arith.constant 0 : i32
    %c0_i32_0 = arith.constant 0 : i32
    %c0_i32_1 = arith.constant 0 : i32
    return %arg0, %c0_i32, %c0_i32_0 : i32, i32, i32
  }
}

</mosaic_0001>

<bundles_post_ra>
// kernel: tpu_custom_call.1
= control target key start
LH: loop header
LB: loop body
LE: loop exit
PB: predicated region body
PF: predicated region fallthrough
CT: control target
= control target key end

     0   :  { %12 = vsyncpa [#allocation5], 0  ;;  %s2254_s0 = inlined_call_operand.hbm [shape: f32[2,16,128], index: 0, kind: input, shape index: {}]   ;;  %s2255_s1 = inlined_call_operand.hbm [shape: bf16[3,128,128], index: 1, kind: input, shape index: {}]   ;;  %s2256_s2 = inlined_call_operand.vmem [shape: f32[1,128], index: 2, kind: input, shape index: {}]   ;;  %s2257_s3 = inlined_call_operand.vmem [shape: f32[1,128], index: 3, kind: input, shape index: {}]   ;;  %s2258_s4 = inlined_call_operand.hbm [shape: bf16[3,128,128], index: 4, kind: input, shape index: {}]   ;;  %s2259_s5 = inlined_call_operand.vmem [shape: f32[1,128], index: 5, kind: input, shape index: {}]   ;;  %s2260_s6 = inlined_call_operand.vmem [shape: f32[1,128], index: 6, kind: input, shape index: {}]   ;;  %s2261_s7 = inlined_call_operand.hbm [shape: f32[2,16,128], index: 7, kind: output, shape index: {}]  }
   0x1   :  { %14 = vsyncpa [#allocation5 + $0x1], 0 }
   0x2   :  { %15 = vsyncpa [#allocation8], 0 }
   0x3   :  { %16 = vsyncpa [#allocation6], 0 }
   0x4   :  { %18 = vsyncpa [#allocation6 + $0x1], 0  ;;  %s1889_s24 = smov 0   ;;  %s1891_s25 = smov 0  }
   0x5   :  { %s1893_s26 = smov 0   ;;  %s1895_s27 = smov 0  }
   0x6 LB: > { %s1910_s28 = sadd.s32 4294967295, %s1835_s27   ;;  %s1274_s29 = sadd.s32 4294967294, %s1835_s27   ;;  %s1835_s27 = sphi %s1895_s27, %s2289_s27   ;;  %s1831_s26 = sphi %s1893_s26, %s2288_s26   ;;  %s1827_s25 = sphi %s1891_s25, %s2287_s25   ;;  %s1823_s24 = sphi %s1889_s24, %s2286_s24  }
   0x7   : > { %p44_p0 = scmp.ne.s32.totalorder %s1827_s25, %s1823_s24  ;;  %p2262_p1 = scmp.eq.s32.totalorder %s1910_s28, 0 }
   0x8   : > { %p200_p3 = scmp.eq.s32.totalorder %s1274_s29, 1  ;;  %p1275_p5 = scmp.ge.s32.totalorder %s1835_s27, 1 }
   0x9   : > { %p1919_p4 = por %p2262_p1, %p44_p0  ;;  %p207_p7 = scmp.lt.s32.totalorder %s1835_s27, 3 }
   0xa   : > { %p1924_p6 = por %p200_p3, %p44_p0  ;;  %s1837_s10 = smov [#allocation7]  }
   0xb   : > { %s2265_s30 = scalar_select %p1919_p4, 1, 0 }
   0xc   : > { %s2266_s8 = scalar_select %p1924_p6, 1, 0 }
   0xd   : > { %p1929_p8 = pnand %p1275_p5, %p207_p7  ;;  %s219_s11 = sshll.u32 %s1837_s10, 4  ;;  %s1933_s11 = int_to_ptr.vmem [resolvable:$true] %s219_s11 }
   0xe   : > { %s1838_s13 = smov [#allocation9]   ;;  %s1679_s17 = scalar_lea.hbm %s2255_s1, 3072 }
   0xf   : > { %p1562_p9 = pneg %p1929_p8  ;;  %s238_s14 = sshll.u32 %s1838_s13, 4  ;;  %s1944_s14 = int_to_ptr.vmem [resolvable:$true] %s238_s14 }
  0x10   : > { %p1680_p12 = scmp.ne.s32.totalorder %s2255_s1, %s1679_s17  ;;  %p1686_p5 = scmp.lt.u32.totalorder %s1679_s17, %s2255_s1 }
  0x11   : > { %p1940_p11 = pnand %p1562_p9, %p2262_p1 }
  0x13   : > { %p1681_p13 = pneg %p1940_p11 }
  0x15   : > { %p1682_p0 = pnand %p1681_p13, %p1680_p12 }
  0x17   : > { %p1683_p3 = pneg %p1682_p0 }
  0x19   : > { %p1688_p7 = pnand %p1686_p5, %p1683_p3 }
  0x1b   : > { %1691 = shalt.err (!%p1688_p7)
}
  0x1c   : > { %s1692_s22 = scalar_lea.vmem %s1933_s11, 3072  ;;  %p1700_p2 = scmp.lt.s32.totalorder %s1933_s11, %s1933_s11 }
  0x1d   : > { %p1693_p9 = scmp.ne.s32.totalorder %s1933_s11, %s1692_s22  ;;  %p1701_p12 = scmp.lt.s32.totalorder %s1692_s22, %s1692_s22 }
  0x1f   : > { %p1695_p10 = pnand %p1693_p9, %p1681_p13  ;;  %p1702_p0 = por %p1701_p12, %p1700_p2 }
  0x21   : > { %p1696_p1 = pneg %p1695_p10 }
  0x23   : > { %p1703_p6 = pnand %p1702_p0, %p1696_p1 }
  0x25   : > { %1706 = shalt.err (!%p1703_p6)
}
  0x26   : > { %s1839_s23 = smov 64   ;;  %s1840_s29 = smov 4  }
  0x27   : > { %1565 = dma.hbm_to_vmem [thread:$0]  (!%p1940_p11), %s2255_s1, 3072, %s1933_s11, [#allocation8], %s1839_s23, %s1839_s23, %s1840_s29  }
  0x28   : > { %s1707_s17 = scalar_lea.hbm %s2258_s4, 3072 }
  0x29   : > { %p1708_p2 = scmp.ne.s32.totalorder %s2258_s4, %s1707_s17  ;;  %p1714_p10 = scmp.lt.u32.totalorder %s1707_s17, %s2258_s4 }
  0x2b   : > { %p1710_p1 = pnand %p1708_p2, %p1681_p13 }
  0x2d   : > { %p1711_p6 = pneg %p1710_p1 }
  0x2f   : > { %p1716_p3 = pnand %p1714_p10, %p1711_p6 }
  0x31   : > { %1719 = shalt.err (!%p1716_p3)
}
  0x32   : > { %s1720_s11 = scalar_lea.vmem %s1944_s14, 3072  ;;  %p1728_p12 = scmp.lt.s32.totalorder %s1944_s14, %s1944_s14 }
  0x33   : > { %p1721_p5 = scmp.ne.s32.totalorder %s1944_s14, %s1720_s11  ;;  %p1729_p0 = scmp.lt.s32.totalorder %s1720_s11, %s1720_s11 }
  0x35   : > { %p1723_p7 = pnand %p1721_p5, %p1681_p13  ;;  %p1730_p2 = por %p1729_p0, %p1728_p12 }
  0x37   : > { %p1724_p9 = pneg %p1723_p7 }
  0x39   : > { %p1731_p1 = pnand %p1730_p2, %p1724_p9 }
  0x3b   : > { %1734 = shalt.err (!%p1731_p1)
}
  0x3c   : > { %1568 = dma.hbm_to_vmem [thread:$0]  (!%p1940_p11), %s2258_s4, 3072, %s1944_s14, [#allocation8], %s1839_s23, %s1839_s23, %s1840_s29  }
  0x3d   : > { %s1999_s13 = sadd.s32 1, %s1835_s27   ;;  %s31_s12 = sadd.s32 1, %s1831_s26 }
  0x3e   : > { %s28_s15 = ssub.s32 %s1835_s27, %s1999_s13  ;;  %p38_p13 = scmp.ne.s32.totalorder %s1831_s26, %s1827_s25 }
  0x3f   : > { %p29_p6 = scmp.eq.s32.totalorder %s28_s15, 0  ;;  %p39_p10 = scmp.eq.s32.totalorder %s1835_s27, 0 }
  0x40   : > { %p2269_p3 = scmp.eq.s32.totalorder %s1910_s28, 1  ;;  %p1579_p7 = scmp.lt.s32.totalorder %s1835_s27, 2 }
  0x41   : > { %s2015_s17 = scalar_select %p29_p6, %s1831_s26, %s31_s12  }
  0x42   : > { %p2009_p5 = por %p2269_p3, %p38_p13  ;;  %p40_p9 = por %p39_p10, %p38_p13 }
  0x43   : > { %s258_s18 = sand.u32 1, %s1831_s26   ;;  %s1354_s14 = sshll.u32 %s1835_s27, 8 }
  0x44   : > { %s2270_s16 = scalar_select %p2009_p5, 1, 0 }
  0x45   : > { %s1279_s19 = sshll.u32 %s258_s18, 4  ;;  %s2022_s20 = scalar_lea.hbm %s2254_s0, %s1354_s14 }
  0x46   : > { %s262_s21 = scalar_lea.vmem [#allocation4], %s1279_s19  ;;  %p2026_p11 = pnand %p1579_p7, %p40_p9 }
  0x47   : > { %s269_s11 = sshll.u32 %s262_s21, 4  ;;  %s2030_s10 = scalar_lea.sflag [#allocation5], %s258_s18  ;;  %s2024_s11 = int_to_ptr.vmem [resolvable:$true] %s269_s11 }
  0x48   : > { %s1735_s12 = scalar_lea.hbm %s2022_s20, 256  ;;  %p1737_p0 = pneg %p2026_p11 }
  0x49   : > { %p1736_p12 = scmp.ne.s32.totalorder %s2022_s20, %s1735_s12  ;;  %s1740_s14 = scalar_lea.hbm %s2254_s0, 512 }
  0x4a   : > { %p1741_p13 = scmp.lt.u32.totalorder %s2022_s20, %s2254_s0  ;;  %p1742_p6 = scmp.lt.u32.totalorder %s1740_s14, %s1735_s12 }
  0x4b   : > { %p1738_p2 = pnand %p1737_p0, %p1736_p12  ;;  %p1744_p3 = scmp.lt.u32.totalorder %s1735_s12, %s2022_s20 }
  0x4c   : > { %p1743_p10 = por %p1742_p6, %p1741_p13 }
  0x4d   : > { %p1739_p1 = pneg %p1738_p2 }
  0x4e   : > { %p1745_p7 = por %p1744_p3, %p1743_p10 }
  0x50   : > { %p1746_p9 = pnand %p1745_p7, %p1739_p1 }
  0x52   : > { %1749 = shalt.err (!%p1746_p9)
}
  0x53   : > { %s1750_s18 = scalar_lea.vmem %s2024_s11, 256  ;;  %s1841_s21 = smov [#allocation4]  }
  0x54   : > { %p1751_p12 = scmp.ne.s32.totalorder %s2024_s11, %s1750_s18  ;;  %s1755_s15 = sshll.u32 %s1841_s21, 4  ;;  %s1756_s15 = int_to_ptr.vmem [resolvable:$false] %s1755_s15 }
  0x55   : > { %s1757_s19 = scalar_lea.vmem %s1756_s15, 512  ;;  %p1758_p4 = scmp.lt.s32.totalorder %s2024_s11, %s1756_s15 }
  0x56   : > { %p1753_p2 = pnand %p1751_p12, %p1737_p0  ;;  %p1759_p13 = scmp.lt.s32.totalorder %s1757_s19, %s1750_s18 }
  0x58   : > { %p1754_p5 = pneg %p1753_p2  ;;  %p1760_p6 = por %p1759_p13, %p1758_p4 }
  0x5a   : > { %p1761_p10 = pnand %p1760_p6, %p1754_p5 }
  0x5c   : > { %1764 = shalt.err (!%p1761_p10)
}
  0x5d   : > { %s1842_s12 = smov 128   ;;  %s1843_s14 = smov 8  }
  0x5e   : > { %1572 = dma.hbm_to_vmem [thread:$0]  (!%p2026_p11), %s2022_s20, 256, %s2024_s11, %s2030_s10, %s1842_s12, %s1842_s12, %s1843_s14  }
  0x5f   : > { %281 = sbr.rel (%p1929_p8) target bundleno = 751 (0x2ef), region = 48  ;;  %s2061_s23 = sand.u32 (!%p1929_p8), 1, %s1827_s25  }
  0x60   : > { %s1283_s29 = sshll.u32 (!%p1929_p8), %s2061_s23, 4  ;;  %s284_s18 = scalar_lea.sflag (!%p1929_p8), [#allocation5], %s2061_s23 }
  0x61   : > { %s287_s21 = scalar_lea.vmem (!%p1929_p8), [#allocation4], %s1283_s29  ;;  %p2272_p4 = scmp.ne.s32.totalorder (!%p1929_p8), %s2265_s30, 0 }
  0x66   : > { %1810 = dma.done.wait (%p2272_p4), %s284_s18, 256  }
  0x67   : > { %1812 = vsyncadd (%p2272_p4), %s284_s18, 4294967040  ;;  %p2273_p5 = scmp.eq.s32.totalorder %s1910_s28, 0 }
  0x69   : > { %1814 = dma.done.wait (%p2273_p5), [#allocation8], 6144   ;;  %p2274_p8 = pmov %p2273_p5 }
  0x6a   : > { %v1844_v0 = vmov 0.0   ;;  %vm1845_vm0 = vmmov 0   ;;  %vm328_vm1 = vsmask.f32 256  ;;  %v1625_v1 = vld [vmem:[#allocation7 + $0x40] sm:$0xff]   ;;  %vm327_vm2 = vcmask 1040384  }
  0x6b   : > { %1816 = vsyncadd (%p2274_p8), [#allocation8], 4294961152  ;;  %1414 = vmatprep.subr.bf16.mxu0 %v1844_v0  ;;  %1430 = vmatprep.mubr.msk.bf16.mxu0 %vm1845_vm0, %v1844_v0  ;;  %vm333_vm3 = vsmask.f32 7938  ;;  %v1626_v2 = vld [vmem:[#allocation7 + $0x48] sm:$0xff]   ;;  %v1627_v5 = vld [vmem:[#allocation7 + $0x50] sm:$0xff]  }
  0x6c   : > { %1474 = vmatprep.subr.bf16.mxu1 %v1844_v0  ;;  %1490 = vmatprep.mubr.msk.bf16.mxu1 %vm1845_vm0, %v1844_v0  ;;  %vm2083_vm4 = vmand %vm327_vm2, %vm328_vm1  ;;  %vm346_vm6 = vsmask.f32 4368  ;;  %v330_v6 = vld [vmem:[#allocation2] sm:$0x1]  ;;  %v335_v7 = vld [vmem:[#allocation2 + $0x8] sm:$0x1] }
  0x6d   : > { %1415 = vmatpush3.bf16.msra.mxu0 %v1625_v1  ;;  %vm2088_vm5 = vmand %vm327_vm2, %vm333_vm3  ;;  %v2093_v8 = vld [vmem:[%s287_s21] sm:$0xff]  ;;  %v1628_v9 = vld [vmem:[#allocation7 + $0x58] sm:$0xff]   ;;  %v331_v10 = vsel %vm2083_vm4, 0, %v330_v6  ;;  %vm368_vm7 = vcmask 1043456   ;;  %vm421_vm10 = vsmask.f32 7424 }
  0x6e   : > { %1416 = vmatprep.subr.bf16.mxu0 %v1844_v0  ;;  %v336_v11 = vsel %vm2088_vm5, 0, %v335_v7  ;;  %v2099_v12 = vld [vmem:[%s287_s21 + $0x8] sm:$0xff]  ;;  %v1355_v13 = vpack.c.bf16 %v2093_v8, %v2093_v8  ;;  %332 = vst [vmem:[#allocation2] sm:$0x1] %v331_v10  ;;  %vm2108_vm8 = vmor %vm328_vm1, %vm346_vm6  ;;  %v1629_v21 = vld [vmem:[#allocation7 + $0x60] sm:$0xff]   ;;  %vm635_vm11 = vcmask 1046528  }
  0x6f   : > { %337 = vst [vmem:[#allocation2 + $0x8] sm:$0x1] %v336_v11  ;;  %v1356_v14 = vpack.c.bf16 %v2099_v12, %v2099_v12  ;;  %vm2114_vm9 = vmand %vm368_vm7, %vm333_vm3  ;;  %v1630_v30 = vld [vmem:[#allocation7 + $0x68] sm:$0xff]   ;;  %v1631_v34 = vld [vmem:[#allocation7 + $0x70] sm:$0xff]   ;;  %s325_s12 = scalar_lea.vmem [#allocation10], %s1283_s29  ;;  %s1359_s18 = sshll.u32 %s1910_s28, 8 }
  0x70   : > { %v349_v15 = vshrl.u32 %v1355_v13, 16  ;;  %v352_v16 = vshll.u32 %v1355_v13, 16  ;;  %v1632_v35 = vld [vmem:[#allocation7 + $0x78] sm:$0xff]   ;;  %v1635_v49 = vld [vmem:[#allocation7] sm:$0xff]   ;;  %v1636_v53 = vld [vmem:[#allocation7 + $0x8] sm:$0xff]   ;;  %s1182_s14 = sshll.u32 %s325_s12, 4  ;;  %s2210_s9 = scalar_lea.hbm %s2261_s7, %s1359_s18  ;;  %s2204_s14 = int_to_ptr.vmem [resolvable:$true] %s1182_s14 }
  0x71   : > { %1417 = vmatpush3.bf16.msra.mxu0 %v1626_v2  ;;  %v357_v17 = vshrl.u32 %v1356_v14, 16  ;;  %v360_v18 = vshll.u32 %v1356_v14, 16  ;;  %v1637_v54 = vld [vmem:[#allocation7 + $0x10] sm:$0xff]   ;;  %v1638_v55 = vld [vmem:[#allocation7 + $0x18] sm:$0xff]   ;;  %v1639_v56 = vld [vmem:[#allocation7 + $0x20] sm:$0xff]   ;;  %s1169_s29 = scalar_lea.sflag [#allocation6], %s2061_s23 }
  0x72   : > { %1418 = vmatprep.subr.bf16.mxu0 %v1844_v0  ;;  %v351_v20 = vrot.slane %v349_v15, 7  ;;  %v1640_v57 = vld [vmem:[#allocation7 + $0x28] sm:$0xff]   ;;  %v1641_v58 = vld [vmem:[#allocation7 + $0x30] sm:$0xff]   ;;  %v1642_v59 = vld [vmem:[#allocation7 + $0x38] sm:$0xff]   ;;  %s1765_s20 = scalar_lea.vmem %s2204_s14, 256  ;;  %p2283_p0 = scmp.ne.s32.totalorder %s2270_s16, 0 }
  0x73   : > { %v359_v22 = vrot.slane %v357_v17, 7  ;;  %v1643_v60 = vld [vmem:[#allocation7 + $0x80] sm:$0xff]   ;;  %v1644_v61 = vld [vmem:[#allocation7 + $0x88] sm:$0xff]   ;;  %v1645_v62 = vld [vmem:[#allocation7 + $0x90] sm:$0xff]   ;;  %p1766_p11 = scmp.ne.s32.totalorder %s2204_s14, %s1765_s20  ;;  %s1846_s28 = smov [#allocation10]  }
  0x74   : > { %v354_v23 = vor.u32 %v352_v16, %v351_v20  ;;  %v355_v24 = vrot.slane %v351_v20, 4  ;;  %v1646_v63 = vld [vmem:[#allocation7 + $0x98] sm:$0xff]   ;;  %v1647_v1 = vld [vmem:[#allocation7 + $0xa0] sm:$0xff]   ;;  %v1648_v2 = vld [vmem:[#allocation7 + $0xa8] sm:$0xff]   ;;  %s1769_s11 = sshll.u32 %s1846_s28, 4  ;;  %s1770_s11 = int_to_ptr.vmem [resolvable:$false] %s1769_s11 }
  0x75   : > { %1419 = vmatpush3.bf16.msra.mxu0 %v1627_v5  ;;  %v362_v26 = vor.u32 %v360_v18, %v359_v22  ;;  %v364_v27 = vrot.slane %v359_v22, 4  ;;  %v370_v28 = vld [vmem:[#allocation2] sm:$0xf]  ;;  %v1649_v5 = vld [vmem:[#allocation7 + $0xb0] sm:$0xff]   ;;  %v1650_v6 = vld [vmem:[#allocation7 + $0xb8] sm:$0xff]   ;;  %p1767_p1 = pnand %p1766_p11, %p2283_p0  ;;  %s1771_s22 = scalar_lea.vmem %s1770_s11, 512 }
  0x76   : > { %1420 = vmatprep.subr.bf16.mxu0 %v1844_v0  ;;  %v374_v29 = vld [vmem:[#allocation2 + $0x8] sm:$0x1]  ;;  %v371_v32 = vsel %vm2114_vm9, %v354_v23, %v370_v28  ;;  %v1652_v7 = vld [vmem:[#allocation9 + $0x40] sm:$0xff]   ;;  %v1653_v10 = vld [vmem:[#allocation9 + $0x48] sm:$0xff]   ;;  %p1772_p7 = scmp.lt.s32.totalorder %s2204_s14, %s1770_s11  ;;  %p1773_p9 = scmp.lt.s32.totalorder %s1771_s22, %s1765_s20 }
  0x77   : > { %v363_v31 = vsel %vm2108_vm8, %v355_v24, %v362_v26  ;;  %v375_v33 = vsel %vm2083_vm4, %v364_v27, %v374_v29  ;;  %372 = vst [vmem:[#allocation2] sm:$0xf] %v371_v32  ;;  %1475 = vmatpush3.bf16.msra.mxu1 %v1652_v7  ;;  %v754_v13 = vld [vmem:[#allocation3 + $0x8] sm:$0x1]  ;;  %v1654_v15 = vld [vmem:[#allocation9 + $0x50] sm:$0xff]   ;;  %v1656_v17 = vld [vmem:[#allocation9 + $0x60] sm:$0xff]   ;;  %p1768_p3 = pneg %p1767_p1 }
  0x78   : > { %373 = vst [vmem:[#allocation2 + $0x4] sm:$0xf] %v363_v31  ;;  %376 = vst [vmem:[#allocation2 + $0x8] sm:$0x1] %v375_v33  ;;  %1476 = vmatprep.subr.bf16.mxu1 %v1844_v0  ;;  %v755_v14 = vsel %vm2088_vm5, 0, %v754_v13  ;;  %v1655_v16 = vld [vmem:[#allocation9 + $0x58] sm:$0xff]   ;;  %p1774_p12 = por %p1773_p9, %p1772_p7 }
  0x79   : > { %1421 = vmatpush3.bf16.msra.mxu0 %v1628_v9  ;;  %v751_v9 = vld [vmem:[#allocation3] sm:$0x1]  ;;  %756 = vst [vmem:[#allocation3 + $0x8] sm:$0x1] %v755_v14  ;;  %v1657_v18 = vld [vmem:[#allocation9 + $0x68] sm:$0xff]   ;;  %v1659_v4 = vld [vmem:[#allocation9 + $0x78] sm:$0xff]  }
  0x7a   : > { %1422 = vmatprep.subr.bf16.mxu0 %v1844_v0  ;;  %v752_v11 = vsel %vm2083_vm4, 0, %v751_v9  ;;  %v1658_v20 = vld [vmem:[#allocation9 + $0x70] sm:$0xff]   ;;  %v1317_v23 = vld [vmem:[%s2257_s3] ss:$0 sm:$0xff]  ;;  %v1662_v3 = vld [vmem:[#allocation9] sm:$0xff]   ;;  %p1775_p2 = pnand %p1774_p12, %p1768_p3 }
  0x7b   : > { %753 = vst [vmem:[#allocation3] sm:$0x1] %v752_v11  ;;  %1477 = vmatpush3.bf16.msra.mxu1 %v1653_v10  ;;  %v1666_v7 = vld [vmem:[#allocation9 + $0x20] sm:$0xff]   ;;  %v1667_v9 = vld [vmem:[#allocation9 + $0x28] sm:$0xff]   ;;  %v1668_v10 = vld [vmem:[#allocation9 + $0x30] sm:$0xff]  }
  0x7c   : > { %1478 = vmatprep.subr.bf16.mxu1 %v1844_v0  ;;  %v1669_v11 = vld [vmem:[#allocation9 + $0x38] sm:$0xff]   ;;  %v1670_v13 = vld [vmem:[#allocation9 + $0x80] sm:$0xff]   ;;  %v1671_v14 = vld [vmem:[#allocation9 + $0x88] sm:$0xff]  }
  0x7d   : > { %1423 = vmatpush3.bf16.msra.mxu0 %v1629_v21  ;;  %v1316_v21 = vld [vmem:[%s2256_s2] ss:$0 sm:$0xff] }
  0x7e   : > { %1424 = vmatprep.subr.bf16.mxu0 %v1844_v0  ;;  %v377_v36 = vld [vmem:[#allocation2] sm:$0xf] }
  0x7f   : > { %v378_v37 = vld [vmem:[#allocation2 + $0x4] sm:$0xf]  ;;  %v1634_v39 = vld [vmem:[#allocation2 + $0x8] ss:$0 sps:$4 sm:$0x11]   ;;  %1479 = vmatpush3.bf16.msra.mxu1 %v1654_v15 }
  0x80   : > { %v1289_v38 = vcombine.low %v377_v36, %v378_v37  ;;  %v614_v40 = vld [vmem:[#allocation2] sm:$0xe]  ;;  %v430_v44 = vshll.u32 %v1634_v39, 16  ;;  %v637_v45 = vrot.slane %v1634_v39, 1  ;;  %1480 = vmatprep.subr.bf16.mxu1 %v1844_v0  ;;  %v1672_v15 = vld [vmem:[#allocation9 + $0x90] sm:$0xff]  }
  0x81   : > { %1425 = vmatpush3.bf16.msra.mxu0 %v1630_v30  ;;  %v1307_v41 = vcombine.low %v614_v40, %v378_v37 }
  0x82   : > { %1426 = vmatprep.subr.bf16.mxu0 %v1844_v0  ;;  %v423_v42 = vshrl.u32 %v1289_v38, 16  ;;  %v425_v43 = vshll.u32 %v1289_v38, 16  ;;  %v432_v48 = vrot.slane %v430_v44, 1  ;;  %v783_v40 = vld [vmem:[#allocation3] sm:$0xf] }
  0x83   : > { %v636_v46 = vrot.slane %v1307_v41, 1  ;;  %1481 = vmatpush3.bf16.msra.mxu1 %v1655_v16  ;;  %v787_v44 = vld [vmem:[#allocation3 + $0x8] sm:$0x1] }
  0x84   : > { %v427_v47 = vrot.slane %v425_v43, 1  ;;  %1482 = vmatprep.subr.bf16.mxu1 %v1844_v0  ;;  %v1673_v16 = vld [vmem:[#allocation9 + $0x98] sm:$0xff]  }
  0x85   : > { %1427 = vmatpush3.bf16.msra.mxu0 %v1631_v34  ;;  %v638_v50 = vsel %vm635_vm11, %v636_v46, %v637_v45 }
  0x86   : > { %1428 = vmatprep.subr.bf16.mxu0 %v1844_v0  ;;  %v428_v51 = vor.u32 %v427_v47, %v423_v42 }
  0x87   : > { %1483 = vmatpush3.bf16.msra.mxu1 %v1656_v17  ;;  %v1674_v17 = vld [vmem:[#allocation9 + $0xa0] sm:$0xff]  }
  0x88   : > { %v433_v52 = vsel %vm421_vm10, %v428_v51, %v432_v48  ;;  %1484 = vmatprep.subr.bf16.mxu1 %v1844_v0 }
  0x89   : > { %1429 = vmatpush3.bf16.msra.mxu0 %v1632_v35 }
  0x8a   : > { %1434 = vmatprep.subr.bf16.mxu0 %v1844_v0 }
  0x8b   : > { %1485 = vmatpush3.bf16.msra.mxu1 %v1657_v18  ;;  %v1675_v18 = vld [vmem:[#allocation9 + $0xa8] sm:$0xff]  }
  0x8c   : > { %1431 = vmatmul.mubr.bf16.vlgmr.msra.gmra.mrb[0].mxu0 %v433_v52  ;;  %1486 = vmatprep.subr.bf16.mxu1 %v1844_v0 }
  0x8d   : > { %1435 = vmatpush3.bf16.msra.mxu0 %v1635_v49  ;;  %1450 = vmatprep.mubr.msk.bf16.mxu0 %vm1845_vm0, %v1844_v0 }
  0x8e   : > { %1436 = vmatprep.subr.bf16.mxu0 %v1844_v0 }
  0x8f   : > { %1487 = vmatpush3.bf16.msra.mxu1 %v1658_v20  ;;  %v1676_v20 = vld [vmem:[#allocation9 + $0xb0] sm:$0xff]  }
  0x90   : > { %1488 = vmatprep.subr.bf16.mxu1 %v1844_v0 }
  0x91   : > { %1437 = vmatpush3.bf16.msra.mxu0 %v1636_v53 }
  0x92   : > { %1438 = vmatprep.subr.bf16.mxu0 %v1844_v0 }
  0x93   : > { %1489 = vmatpush3.bf16.msra.mxu1 %v1659_v4  ;;  %v1677_v4 = vld [vmem:[#allocation9 + $0xb8] sm:$0xff]  }
  0x94   : > { %1494 = vmatprep.subr.bf16.mxu1 %v1844_v0 }
  0x95   : > { %1439 = vmatpush3.bf16.msra.mxu0 %v1637_v54 }
  0x96   : > { %1440 = vmatprep.subr.bf16.mxu0 %v1844_v0 }
  0x99   : > { %1441 = vmatpush3.bf16.msra.mxu0 %v1638_v55 }
  0x9a   : > { %1442 = vmatprep.subr.bf16.mxu0 %v1844_v0 }
  0x9d   : > { %1443 = vmatpush3.bf16.msra.mxu0 %v1639_v56 }
  0x9e   : > { %1444 = vmatprep.subr.bf16.mxu0 %v1844_v0 }
  0xa1   : > { %1445 = vmatpush3.bf16.msra.mxu0 %v1640_v57 }
  0xa2   : > { %1446 = vmatprep.subr.bf16.mxu0 %v1844_v0 }
  0xa5   : > { %1447 = vmatpush3.bf16.msra.mxu0 %v1641_v58 }
  0xa6   : > { %1448 = vmatprep.subr.bf16.mxu0 %v1844_v0 }
  0xa9   : > { %1449 = vmatpush3.bf16.msra.mxu0 %v1642_v59 }
  0xaa   : > { %1454 = vmatprep.subr.bf16.mxu0 %v1844_v0 }
  0xac   : > { %1451 = vmatmul.mubr.bf16.vlgmr.msra.gmra.mrb[0].mxu0 %v1289_v38 }
  0xad   : > { %1455 = vmatpush3.bf16.msra.mxu0 %v1643_v60  ;;  %1470 = vmatprep.mubr.msk.bf16.mxu0 %vm1845_vm0, %v1844_v0 }
  0xae   : > { %1456 = vmatprep.subr.bf16.mxu0 %v1844_v0 }
  0xb1   : > { %1457 = vmatpush3.bf16.msra.mxu0 %v1644_v61 }
  0xb2   : > { %1458 = vmatprep.subr.bf16.mxu0 %v1844_v0 }
  0xb5   : > { %1459 = vmatpush3.bf16.msra.mxu0 %v1645_v62 }
  0xb6   : > { %1460 = vmatprep.subr.bf16.mxu0 %v1844_v0 }
  0xb9   : > { %1461 = vmatpush3.bf16.msra.mxu0 %v1646_v63 }
  0xba   : > { %1462 = vmatprep.subr.bf16.mxu0 %v1844_v0 }
  0xbd   : > { %1463 = vmatpush3.bf16.msra.mxu0 %v1647_v1 }
  0xbe   : > { %1464 = vmatprep.subr.bf16.mxu0 %v1844_v0 }
  0xc1   : > { %1465 = vmatpush3.bf16.msra.mxu0 %v1648_v2  ;;  %v1663_v2 = vld [vmem:[#allocation9 + $0x8] sm:$0xff]  }
  0xc2   : > { %1466 = vmatprep.subr.bf16.mxu0 %v1844_v0 }
  0xc5   : > { %1467 = vmatpush3.bf16.msra.mxu0 %v1649_v5  ;;  %v1664_v5 = vld [vmem:[#allocation9 + $0x10] sm:$0xff]  }
  0xc6   : > { %1468 = vmatprep.subr.bf16.mxu0 %v1844_v0 }
  0xc9   : > { %1469 = vmatpush3.bf16.msra.mxu0 %v1650_v6  ;;  %v1665_v6 = vld [vmem:[#allocation9 + $0x18] sm:$0xff]  }
  0xcc   : > { %1471 = vmatmul.mubr.bf16.vlgmr.msra.gmra.mrb[0].mxu0 %v638_v50 }
 0x19f   : > { %v722_v22 = vpop.f32.mrb[0].mxu0 }
 0x1a0   : > { %v738_v24 = vmul.f32 %v1316_v21, %v722_v22  ;;  %v1472_v26 = vpop.f32.mrb[1].mxu0 }
 0x1a1   : > { %v725_v27 = vpop.f32.mrb[2].mxu0 }
 0x1a2   : > { %v747_v28 = vadd.f32 %v1317_v23, %v738_v24  ;;  %v739_v29 = vmul.f32 %v1316_v21, %v725_v27  ;;  %v1473_v30 = vpop.f32.mrb[3].mxu0  ;;  %v1347_v21 = vld [vmem:[%s2259_s5] ss:$0 sm:$0xff] }
 0x1a4   : > { %v749_v31 = vmax.f32 %v747_v28, 0.0  ;;  %v748_v32 = vadd.f32 %v1317_v23, %v739_v29  ;;  %v1348_v23 = vld [vmem:[%s2260_s6] ss:$0 sm:$0xff] }
 0x1a6   : > { %v1357_v33 = vpack.c.bf16 %v749_v31, %v749_v31  ;;  %v750_v34 = vmax.f32 %v748_v32, 0.0 }
 0x1a8   : > { %v764_v35 = vshrl.u32 %v1357_v33, 16  ;;  %v1358_v36 = vpack.c.bf16 %v750_v34, %v750_v34  ;;  %v767_v38 = vshll.u32 %v1357_v33, 16 }
 0x1aa   : > { %v766_v37 = vrot.slane %v764_v35, 7  ;;  %v772_v39 = vshrl.u32 %v1358_v36, 16  ;;  %v775_v43 = vshll.u32 %v1358_v36, 16 }
 0x1ac   : > { %v769_v41 = vor.u32 %v767_v38, %v766_v37  ;;  %v774_v42 = vrot.slane %v772_v39, 7  ;;  %v770_v45 = vrot.slane %v766_v37, 4 }
 0x1ae   : > { %v784_v46 = vsel %vm2114_vm9, %v769_v41, %v783_v40  ;;  %v777_v47 = vor.u32 %v775_v43, %v774_v42  ;;  %v779_v48 = vrot.slane %v774_v42, 4 }
 0x1af   : > { %785 = vst [vmem:[#allocation3] sm:$0xf] %v784_v46 }
 0x1b0   : > { %v778_v49 = vsel %vm2108_vm8, %v770_v45, %v777_v47  ;;  %v788_v50 = vsel %vm2083_vm4, %v779_v48, %v787_v44 }
 0x1b1   : > { %786 = vst [vmem:[#allocation3 + $0x4] sm:$0xf] %v778_v49  ;;  %789 = vst [vmem:[#allocation3 + $0x8] sm:$0x1] %v788_v50 }
 0x1b6   : > { %v790_v51 = vld [vmem:[#allocation3] sm:$0xf] }
 0x1b7   : > { %v1026_v53 = vld [vmem:[#allocation3] sm:$0xe] }
 0x1b8   : > { %v791_v52 = vld [vmem:[#allocation3 + $0x4] sm:$0xf]  ;;  %v1661_v55 = vld [vmem:[#allocation3 + $0x8] ss:$0 sps:$4 sm:$0x11]  }
 0x1b9   : > { %v1320_v54 = vcombine.low %v790_v51, %v791_v52  ;;  %v1338_v56 = vcombine.low %v1026_v53, %v791_v52  ;;  %v842_v25 = vshll.u32 %v1661_v55, 16  ;;  %v1048_v59 = vrot.slane %v1661_v55, 1 }
 0x1bb   : > { %v837_v57 = vshll.u32 %v1320_v54, 16  ;;  %v1047_v58 = vrot.slane %v1338_v56, 1  ;;  %v835_v60 = vshrl.u32 %v1320_v54, 16  ;;  %v844_v63 = vrot.slane %v842_v25, 1 }
 0x1bd   : > { %v839_v61 = vrot.slane %v837_v57, 1  ;;  %v1049_v19 = vsel %vm635_vm11, %v1047_v58, %v1048_v59 }
 0x1bf   : > { %v840_v62 = vor.u32 %v839_v61, %v835_v60 }
 0x1c1   : > { %v845_v1 = vsel %vm421_vm10, %v840_v62, %v844_v63 }
 0x1c2   : > { %1491 = vmatmul.mubr.bf16.vlgmr.msra.gmra.mrb[0].mxu1 %v845_v1 }
 0x1c3   : > { %1495 = vmatpush3.bf16.msra.mxu1 %v1662_v3  ;;  %1510 = vmatprep.mubr.msk.bf16.mxu1 %vm1845_vm0, %v1844_v0 }
 0x1c4   : > { %1496 = vmatprep.subr.bf16.mxu1 %v1844_v0 }
 0x1c7   : > { %1497 = vmatpush3.bf16.msra.mxu1 %v1663_v2 }
 0x1c8   : > { %1498 = vmatprep.subr.bf16.mxu1 %v1844_v0 }
 0x1cb   : > { %1499 = vmatpush3.bf16.msra.mxu1 %v1664_v5 }
 0x1cc   : > { %1500 = vmatprep.subr.bf16.mxu1 %v1844_v0 }
 0x1cf   : > { %1501 = vmatpush3.bf16.msra.mxu1 %v1665_v6 }
 0x1d0   : > { %1502 = vmatprep.subr.bf16.mxu1 %v1844_v0 }
 0x1d3   : > { %1503 = vmatpush3.bf16.msra.mxu1 %v1666_v7 }
 0x1d4   : > { %1504 = vmatprep.subr.bf16.mxu1 %v1844_v0 }
 0x1d7   : > { %1505 = vmatpush3.bf16.msra.mxu1 %v1667_v9 }
 0x1d8   : > { %1506 = vmatprep.subr.bf16.mxu1 %v1844_v0 }
 0x1db   : > { %1507 = vmatpush3.bf16.msra.mxu1 %v1668_v10 }
 0x1dc   : > { %1508 = vmatprep.subr.bf16.mxu1 %v1844_v0 }
 0x1df   : > { %1509 = vmatpush3.bf16.msra.mxu1 %v1669_v11 }
 0x1e0   : > { %1514 = vmatprep.subr.bf16.mxu1 %v1844_v0 }
 0x1e2   : > { %1511 = vmatmul.mubr.bf16.vlgmr.msra.gmra.mrb[0].mxu1 %v1320_v54 }
 0x1e3   : > { %1515 = vmatpush3.bf16.msra.mxu1 %v1670_v13  ;;  %1530 = vmatprep.mubr.msk.bf16.mxu1 %vm1845_vm0, %v1844_v0 }
 0x1e4   : > { %1516 = vmatprep.subr.bf16.mxu1 %v1844_v0 }
 0x1e7   : > { %1517 = vmatpush3.bf16.msra.mxu1 %v1671_v14 }
 0x1e8   : > { %1518 = vmatprep.subr.bf16.mxu1 %v1844_v0 }
 0x1eb   : > { %1519 = vmatpush3.bf16.msra.mxu1 %v1672_v15 }
 0x1ec   : > { %1520 = vmatprep.subr.bf16.mxu1 %v1844_v0 }
 0x1ef   : > { %1521 = vmatpush3.bf16.msra.mxu1 %v1673_v16 }
 0x1f0   : > { %1522 = vmatprep.subr.bf16.mxu1 %v1844_v0 }
 0x1f3   : > { %1523 = vmatpush3.bf16.msra.mxu1 %v1674_v17 }
 0x1f4   : > { %1524 = vmatprep.subr.bf16.mxu1 %v1844_v0 }
 0x1f7   : > { %1525 = vmatpush3.bf16.msra.mxu1 %v1675_v18 }
 0x1f8   : > { %1526 = vmatprep.subr.bf16.mxu1 %v1844_v0 }
 0x1fb   : > { %1527 = vmatpush3.bf16.msra.mxu1 %v1676_v20 }
 0x1fc   : > { %1528 = vmatprep.subr.bf16.mxu1 %v1844_v0 }
 0x1ff   : > { %1529 = vmatpush3.bf16.msra.mxu1 %v1677_v4 }
 0x202   : > { %1531 = vmatmul.mubr.bf16.vlgmr.msra.gmra.mrb[0].mxu1 %v1049_v19 }
 0x2d5   : > { %v1133_v22 = vpop.f32.mrb[0].mxu1 }
 0x2d6   : > { %v1149_v24 = vmul.f32 %v1347_v21, %v1133_v22  ;;  %v1532_v26 = vpop.f32.mrb[1].mxu1 }
 0x2d7   : > { %v1136_v27 = vpop.f32.mrb[2].mxu1 }
 0x2d8   : > { %v1158_v28 = vadd.f32 %v1348_v23, %v1149_v24  ;;  %v1150_v29 = vmul.f32 %v1347_v21, %v1136_v27  ;;  %v1533_v30 = vpop.f32.mrb[3].mxu1 }
 0x2da   : > { %v1162_v0 = vadd.f32 %v1158_v28, %v2093_v8  ;;  %v1159_v31 = vadd.f32 %v1348_v23, %v1150_v29 }
 0x2dc   : > { %v1164_v32 = vmax.f32 %v1162_v0, 0.0  ;;  %v1163_v33 = vadd.f32 %v1159_v31, %v2099_v12 }
 0x2de   : > { %1166 = vst [vmem:[%s325_s12] sm:$0xff] %v1164_v32  ;;  %v1165_v34 = vmax.f32 %v1163_v33, 0.0 }
 0x2e0   : > { %1167 = vst [vmem:[%s325_s12 + $0x8] sm:$0xff] %v1165_v34 }
 0x2e1   : > { %1778 = shalt.err (!%p1775_p2)
}
 0x2e2   : > { %s1779_s10 = scalar_lea.hbm %s2210_s9, 256  ;;  %s1783_s12 = scalar_lea.hbm %s2261_s7, 512 }
 0x2e3   : > { %p1780_p13 = scmp.ne.s32.totalorder %s2210_s9, %s1779_s10  ;;  %p1784_p4 = scmp.lt.u32.totalorder %s2210_s9, %s2261_s7 }
 0x2e4   : > { %p1785_p5 = scmp.lt.u32.totalorder %s1783_s12, %s1779_s10  ;;  %p1787_p11 = scmp.lt.u32.totalorder %s1779_s10, %s2210_s9 }
 0x2e5   : > { %p1781_p6 = pnand %p1780_p13, %p2283_p0 }
 0x2e6   : > { %p1786_p8 = por %p1785_p5, %p1784_p4 }
 0x2e7   : > { %p1782_p10 = pneg %p1781_p6 }
 0x2e8   : > { %p1788_p1 = por %p1787_p11, %p1786_p8 }
 0x2ea   : > { %p1789_p3 = pnand %p1788_p1, %p1782_p10 }
 0x2ec   : > { %1792 = shalt.err (!%p1789_p3)
}
 0x2ed   : > { %s1847_s30 = smov 128   ;;  %s1848_s20 = smov 8  }
 0x2ee   : > { %1560 = dma.vmem_to_hbm [thread:$0]  (%p2283_p0), %s2204_s14, 256, %s2210_s9, %s1169_s29, %s1847_s30, %s1847_s30, %s1848_s20  }
 0x2ef PF: > { %s1197_s28 = sand.u32 1, %s1823_s24   ;;  %p2284_p7 = scmp.ne.s32.totalorder %s2266_s8, 0 }
 0x2f0   : > { %p2285_p9 = scmp.ge.s32.totalorder %s1835_s27, 2  ;;  %s1198_s11 = scalar_lea.sflag [#allocation6], %s1197_s28 }
 0x2f2   : > { %p1574_p12 = pnand %p2285_p9, %p2284_p7 }
 0x2f4   : > { %1818 = dma.done.wait (!%p1574_p12), %s1198_s11, 256  }
 0x2f5   : > { %1820 = vsyncadd (!%p1574_p12), %s1198_s11, 4294967040  ;;  %p21_p2 = scmp.ge.s32.totalorder %s1999_s13, 4   ;;  %s2286_s24 = smov %s1827_s25 }
 0x2f6   : > { %s2287_s25 = smov %s1831_s26  ;;  %s2288_s26 = smov %s2015_s17 }
 0x2f7   : > { %s2289_s27 = smov %s1999_s13  ;;  %23 = sbr.rel (!%p21_p2) target bundleno = 6 (0x6), region = 105 }
 0x2fe   :  { %1203 = vsyncpa [#allocation5], 1 }
 0x2ff   :  { %1205 = vsyncpa [#allocation5 + $0x1], 1 }
 0x300   :  { %1206 = vsyncpa [#allocation8], 1 }
 0x301   :  { %1207 = vsyncpa [#allocation6], 1 }
 0x302   :  { %1209 = vsyncpa [#allocation6 + $0x1], 1 }

</bundles_post_ra>
